<compile_context>
chip_gen: v7x
topology: tpu7x:2x2x1
jax: 0.10.0
libtpu: 0.0.40
codegen_flags: <defaults>
</compile_context>

<pallas_src>
import math

import jax
import jax.numpy as jnp
import numpy as np
from jax.experimental import pallas as pl
from jax.experimental.pallas import tpu as pltpu

# ----- config (small, consistent with the module) -----
B = 2            # batch
S = 8            # sequence length
HIDDEN = 32      # cfgs.hidden_size
HEADS = 4        # cfgs.multi_head
HEAD_DIM = HIDDEN // HEADS   # cfgs.hidden_size_head
FF = 64          # cfgs.ff_size
EPS = 1e-6       # LayerNorm eps
NEG = -1e9
LANES = 128      # lane padding for the weight slab


def _layer_norm(t, gamma, beta):
    # MCAN LayerNorm: unbiased std (n-1), eps added to std (outside sqrt).
    # Exact reciprocal here on purpose (error would compound across stacked layers).
    mean = jnp.mean(t, axis=-1, keepdims=True)
    var = jnp.sum((t - mean) ** 2, axis=-1, keepdims=True) * (1.0 / (HIDDEN - 1))
    return gamma * (t - mean) / (jnp.sqrt(var) + EPS) + beta


def sa_kernel(x_ref, amask_ref, w_ref, b_ref, out_ref):
    # x_ref:     (R, 32)   f32 activations (R = B*S rows)
    # amask_ref: (R, R)    f32 additive attention mask (block-diag + key mask)
    # w_ref:     (224, 128) bf16 weight slab:
    #              rows   0: 32  -> [Wq*scale | Wk | Wv] lane-padded 96->128
    #              rows  32: 64  -> Wm  lane-padded 32->128
    #              rows  64: 96  -> W1  lane-padded 64->128
    #              rows  96:224  -> W2  padded (64,32)->(128,128) (zero rows/cols)
    # b_ref:     (8, 128)  f32 bias slab:
    #              [bqkv | bf1 | bm | g1 | beta1 | bf2 | g2 | beta2] lane-padded
    x = x_ref[...]
    amask = amask_ref[...]
    b = b_ref[...]

    # ---- fused QKV projection: one MXU op (scale pre-folded into Wq / bq) ----
    qkv = jnp.dot(x, w_ref[0:HIDDEN, :],
                  preferred_element_type=jnp.float32) + b[0:1, :]

    # ---- multi-head attention: all B*S rows at once per head ----
    head_outs = []
    for h in range(HEADS):
        c = h * HEAD_DIM
        qh = qkv[:, c:c + HEAD_DIM]
        kh = qkv[:, HIDDEN + c:HIDDEN + c + HEAD_DIM]
        vh = qkv[:, 2 * HIDDEN + c:2 * HIDDEN + c + HEAD_DIM]
        # scores = q_h @ k_h^T over ALL rows; cross-batch / masked keys killed
        # by the additive mask (exp underflows to exactly 0 in f32).
        s = jax.lax.dot_general(qh, kh, (((1,), (1,)), ((), ())),
                                preferred_element_type=jnp.float32) + amask
        m = jnp.max(s, axis=-1, keepdims=True)
        p = jnp.exp(s - m)
        p = p * pl.reciprocal(jnp.sum(p, axis=-1, keepdims=True), approx=True)
        head_outs.append(jnp.dot(p, vh, preferred_element_type=jnp.float32))
    # lane-axis head concat (intra-vreg, XLU slot) -> one merge matmul
    ho = jnp.concatenate(head_outs, axis=-1)                       # (R, 32)
    atted = jnp.dot(ho, w_ref[HIDDEN:2 * HIDDEN, :],
                    preferred_element_type=jnp.float32)[:, 0:HIDDEN] \
        + b[2:3, 0:HIDDEN]

    # ---- residual + norm1 (dropout1 identity) ----
    y = _layer_norm(x + atted, b[3:4, 0:HIDDEN], b[4:5, 0:HIDDEN])

    # ---- FFN: Linear -> ReLU -> Linear (FC dropout identity) ----
    # W1 is lane-padded to 128 and W2 is zero-row-padded to 128, so the padded
    # h1 lanes are annihilated without any slicing between the two matmuls.
    h1 = jnp.maximum(
        jnp.dot(y, w_ref[2 * HIDDEN:3 * HIDDEN, :],
                preferred_element_type=jnp.float32) + b[1:2, :], 0.0)
    ffn = jnp.dot(h1, w_ref[3 * HIDDEN:3 * HIDDEN + LANES, :],
                  preferred_element_type=jnp.float32)[:, 0:HIDDEN] \
        + b[5:6, 0:HIDDEN]

    # ---- residual + norm2 (dropout2 identity) ----
    out_ref[...] = _layer_norm(y + ffn, b[6:7, 0:HIDDEN], b[7:8, 0:HIDDEN])


def pack_params(params):
    """Host-side (one-off) packing of the 16 module params into 2 kernel refs."""
    (wq, bq, wk, bk, wv, bv, wm, bm,
     a1, bln1, w1, bf1, w2, bf2, a2, bln2) = params
    scale = 1.0 / math.sqrt(HEAD_DIM)

    def pad_lanes(t):
        return jnp.pad(t, ((0, 0), (0, LANES - t.shape[1])))

    wqkv = jnp.concatenate([wq * scale, wk, wv], axis=1)           # (32, 96)
    bqkv = jnp.concatenate([bq * scale, bk, bv], axis=1)           # (1, 96)
    w2p = jnp.pad(w2, ((0, LANES - FF), (0, LANES - HIDDEN)))      # (128, 128)

    wslab = jnp.concatenate([
        pad_lanes(wqkv),      # rows   0: 32
        pad_lanes(wm),        # rows  32: 64
        pad_lanes(w1),        # rows  64: 96
        w2p,                  # rows  96:224
    ], axis=0).astype(jnp.bfloat16)                                # (224, 128)

    bslab = jnp.concatenate([
        pad_lanes(bqkv),      # row 0
        pad_lanes(bf1),       # row 1
        pad_lanes(bm),        # row 2
        pad_lanes(a1),        # row 3
        pad_lanes(bln1),      # row 4
        pad_lanes(bf2),       # row 5
        pad_lanes(a2),        # row 6
        pad_lanes(bln2),      # row 7
    ], axis=0).astype(jnp.float32)                                 # (8, 128)
    return (wslab, bslab)


def sa_forward(x, mask, wslab, bslab):
    """x: (B,S,D) f32, mask: (B,1,S) f32 (1.0 = masked key position)."""
    bb, ss, dd = x.shape
    r = bb * ss
    x2 = x.reshape(r, dd)                      # fold batch into the row axis

    # Additive mask (built once, XLA-side): cross-batch -> 2*NEG, masked key -> +NEG.
    bids = jnp.arange(r, dtype=jnp.int32) // ss
    amask = jnp.where(bids[:, None] != bids[None, :],
                      jnp.float32(2.0 * NEG), jnp.float32(0.0))
    amask = amask + mask.reshape(1, r).astype(jnp.float32) * NEG   # (R, R)

    vmem = lambda: pl.BlockSpec(memory_space=pltpu.MemorySpace.VMEM)
    out2 = pl.pallas_call(
        sa_kernel,
        out_shape=jax.ShapeDtypeStruct((r, dd), jnp.float32),
        in_specs=[vmem(), vmem(), vmem(), vmem()],
        out_specs=vmem(),
    )(x2, amask, wslab, bslab)
    return out2.reshape(bb, ss, dd)


def sa_reference(x, mask, params):
    (wq, bq, wk, bk, wv, bv, wm, bm,
     a1, bln1, w1, bf1, w2, bf2, a2, bln2) = params

    q = x @ wq + bq
    k = x @ wk + bk
    v = x @ wv + bv

    def split(t):  # (B,S,D) -> (B,H,S,Dh)
        return t.reshape(B, S, HEADS, HEAD_DIM).transpose(0, 2, 1, 3)

    qh, kh, vh = split(q), split(k), split(v)
    scores = jnp.einsum("bhqd,bhkd->bhqk", qh, kh) / math.sqrt(HEAD_DIM)
    scores = jnp.where(mask[:, :, None, :] > 0.0, NEG, scores)   # (B,H,S,S)
    p = jax.nn.softmax(scores, axis=-1)
    att = jnp.einsum("bhqk,bhkd->bhqd", p, vh).transpose(0, 2, 1, 3).reshape(B, S, HIDDEN)
    att = att @ wm + bm

    def ln(t, g, bbias):
        mean = jnp.mean(t, axis=-1, keepdims=True)
        var = jnp.sum((t - mean) ** 2, axis=-1, keepdims=True) / (HIDDEN - 1)
        return g * (t - mean) / (jnp.sqrt(var) + EPS) + bbias

    y = ln(x + att, a1, bln1)
    ffn = jnp.maximum(y @ w1 + bf1, 0.0) @ w2 + bf2
    return ln(y + ffn, a2, bln2)


def make_params(key):
    ks = jax.random.split(key, 16)
    scl = 0.08
    w = lambda k, shape: jax.random.normal(k, shape, jnp.float32) * scl
    bias = lambda k, n: jax.random.normal(k, (1, n), jnp.float32) * 0.01
    wq, wk, wv, wm = (w(ks[i], (HIDDEN, HIDDEN)) for i in range(4))
    w1 = w(ks[4], (HIDDEN, FF))
    w2 = w(ks[5], (FF, HIDDEN))
    bq, bk, bv, bm = (bias(ks[i], HIDDEN) for i in range(6, 10))
    bf1 = bias(ks[10], FF)
    bf2 = bias(ks[11], HIDDEN)
    a1 = 1.0 + bias(ks[12], HIDDEN)
    bln1 = bias(ks[13], HIDDEN)
    a2 = 1.0 + bias(ks[14], HIDDEN)
    bln2 = bias(ks[15], HIDDEN)
    return (wq, bq, wk, bk, wv, bv, wm, bm,
            a1, bln1, w1, bf1, w2, bf2, a2, bln2)


if __name__ == "__main__":
    key = jax.random.PRNGKey(0)
    kx, kp = jax.random.split(key)
    x = jax.random.normal(kx, (B, S, HIDDEN), jnp.float32)
    # mask: last two key positions of batch 1 are masked; batch 0 unmasked.
    mask = jnp.zeros((B, 1, S), jnp.float32)
    mask = mask.at[1, 0, S - 2:].set(1.0)

    params = make_params(kp)
    wslab, bslab = pack_params(params)

    out = jax.block_until_ready(sa_forward(x, mask, wslab, bslab))
    ref = sa_reference(x, mask, params)

    # Tolerance accounts for default (bf16-pass) MXU precision, bf16 weights,
    # and the approximate softmax reciprocal (LayerNorm reciprocal is exact).
    np.testing.assert_allclose(np.asarray(out), np.asarray(ref),
                               rtol=2e-2, atol=2e-2)
    print("KERNEL_OK")
</pallas_src>

<mosaic_0001>
module attributes {stable_mosaic.version = 11 : i64} {
  func.func @sa_kernel(%arg0: memref<16x32xf32, #tpu.memory_space<vmem>>, %arg1: memref<16x16xf32, #tpu.memory_space<vmem>>, %arg2: memref<224x128xbf16, #tpu.memory_space<vmem>>, %arg3: memref<8x128xf32, #tpu.memory_space<vmem>>, %arg4: memref<16x32xf32, #tpu.memory_space<vmem>>) attributes {dimension_semantics = [], scalar_prefetch = 0 : i64, scratch_operands = 0 : i64, tpu.core_type = #tpu.core_type<tc>} {
    %c0 = arith.constant 0 : index
    %c0_0 = arith.constant 0 : index
    %0 = vector.load %arg0[%c0, %c0_0] : memref<16x32xf32, #tpu.memory_space<vmem>>, vector<16x32xf32>
    %c0_1 = arith.constant 0 : index
    %c0_2 = arith.constant 0 : index
    %1 = vector.load %arg1[%c0_1, %c0_2] : memref<16x16xf32, #tpu.memory_space<vmem>>, vector<16x16xf32>
    %c0_3 = arith.constant 0 : index
    %c0_4 = arith.constant 0 : index
    %2 = vector.load %arg3[%c0_3, %c0_4] : memref<8x128xf32, #tpu.memory_space<vmem>>, vector<8x128xf32>
    %c0_5 = arith.constant 0 : index
    %c0_6 = arith.constant 0 : index
    %3 = vector.load %arg2[%c0_5, %c0_6] : memref<224x128xbf16, #tpu.memory_space<vmem>>, vector<32x128xbf16>
    %cst = arith.constant dense<0.000000e+00> : vector<16x128xf32>
    %4 = tpu.matmul %0, %3, %cst {dimension_numbers = #tpu.dot_dimension_numbers<[1], [0], [0], [1], [0, 0, 1, 1], [], []>} : vector<16x32xf32>, vector<32x128xbf16>, vector<16x128xf32> -> vector<16x128xf32>
    %5 = vector.extract_strided_slice %2 {offsets = [0, 0], sizes = [1, 128], strides = [1, 1]} : vector<8x128xf32> to vector<1x128xf32>
    %6 = vector.broadcast %5 : vector<1x128xf32> to vector<16x128xf32>
    %7 = arith.addf %4, %6 : vector<16x128xf32>
    %8 = vector.extract_strided_slice %7 {offsets = [0, 0], sizes = [16, 8], strides = [1, 1]} : vector<16x128xf32> to vector<16x8xf32>
    %9 = vector.extract_strided_slice %7 {offsets = [0, 32], sizes = [16, 8], strides = [1, 1]} : vector<16x128xf32> to vector<16x8xf32>
    %10 = vector.extract_strided_slice %7 {offsets = [0, 64], sizes = [16, 8], strides = [1, 1]} : vector<16x128xf32> to vector<16x8xf32>
    %cst_7 = arith.constant dense<0.000000e+00> : vector<16x16xf32>
    %11 = tpu.matmul %8, %9, %cst_7 {dimension_numbers = #tpu.dot_dimension_numbers<[1], [1], [0], [0], [0, 0, 1, 0], [], []>} : vector<16x8xf32>, vector<16x8xf32>, vector<16x16xf32> -> vector<16x16xf32>
    %12 = arith.addf %11, %1 : vector<16x16xf32>
    %cst_8 = arith.constant dense<0xFF800000> : vector<16xf32>
    %13 = vector.multi_reduction <maximumf>, %12, %cst_8 [1] : vector<16x16xf32> to vector<16xf32>
    %14 = vector.shape_cast %13 : vector<16xf32> to vector<16x1xf32>
    %15 = vector.broadcast %14 : vector<16x1xf32> to vector<16x16xf32>
    %16 = arith.subf %12, %15 : vector<16x16xf32>
    %17 = math.exp %16 : vector<16x16xf32>
    %cst_9 = arith.constant dense<0.000000e+00> : vector<16xf32>
    %18 = vector.multi_reduction <add>, %17, %cst_9 [1] : vector<16x16xf32> to vector<16xf32>
    %19 = vector.shape_cast %18 : vector<16xf32> to vector<16x1xf32>
    %20 = tpu.reciprocal %19 {approx = true} : vector<16x1xf32> -> vector<16x1xf32>
    %21 = vector.broadcast %20 : vector<16x1xf32> to vector<16x16xf32>
    %22 = arith.mulf %17, %21 : vector<16x16xf32>
    %cst_10 = arith.constant dense<0.000000e+00> : vector<16x8xf32>
    %23 = tpu.matmul %22, %10, %cst_10 {dimension_numbers = #tpu.dot_dimension_numbers<[1], [0], [0], [1], [0, 0, 1, 1], [], []>} : vector<16x16xf32>, vector<16x8xf32>, vector<16x8xf32> -> vector<16x8xf32>
    %24 = vector.extract_strided_slice %7 {offsets = [0, 8], sizes = [16, 8], strides = [1, 1]} : vector<16x128xf32> to vector<16x8xf32>
    %25 = vector.extract_strided_slice %7 {offsets = [0, 40], sizes = [16, 8], strides = [1, 1]} : vector<16x128xf32> to vector<16x8xf32>
    %26 = vector.extract_strided_slice %7 {offsets = [0, 72], sizes = [16, 8], strides = [1, 1]} : vector<16x128xf32> to vector<16x8xf32>
    %cst_11 = arith.constant dense<0.000000e+00> : vector<16x16xf32>
    %27 = tpu.matmul %24, %25, %cst_11 {dimension_numbers = #tpu.dot_dimension_numbers<[1], [1], [0], [0], [0, 0, 1, 0], [], []>} : vector<16x8xf32>, vector<16x8xf32>, vector<16x16xf32> -> vector<16x16xf32>
    %28 = arith.addf %27, %1 : vector<16x16xf32>
    %cst_12 = arith.constant dense<0xFF800000> : vector<16xf32>
    %29 = vector.multi_reduction <maximumf>, %28, %cst_12 [1] : vector<16x16xf32> to vector<16xf32>
    %30 = vector.shape_cast %29 : vector<16xf32> to vector<16x1xf32>
    %31 = vector.broadcast %30 : vector<16x1xf32> to vector<16x16xf32>
    %32 = arith.subf %28, %31 : vector<16x16xf32>
    %33 = math.exp %32 : vector<16x16xf32>
    %cst_13 = arith.constant dense<0.000000e+00> : vector<16xf32>
    %34 = vector.multi_reduction <add>, %33, %cst_13 [1] : vector<16x16xf32> to vector<16xf32>
    %35 = vector.shape_cast %34 : vector<16xf32> to vector<16x1xf32>
    %36 = tpu.reciprocal %35 {approx = true} : vector<16x1xf32> -> vector<16x1xf32>
    %37 = vector.broadcast %36 : vector<16x1xf32> to vector<16x16xf32>
    %38 = arith.mulf %33, %37 : vector<16x16xf32>
    %cst_14 = arith.constant dense<0.000000e+00> : vector<16x8xf32>
    %39 = tpu.matmul %38, %26, %cst_14 {dimension_numbers = #tpu.dot_dimension_numbers<[1], [0], [0], [1], [0, 0, 1, 1], [], []>} : vector<16x16xf32>, vector<16x8xf32>, vector<16x8xf32> -> vector<16x8xf32>
    %40 = vector.extract_strided_slice %7 {offsets = [0, 16], sizes = [16, 8], strides = [1, 1]} : vector<16x128xf32> to vector<16x8xf32>
    %41 = vector.extract_strided_slice %7 {offsets = [0, 48], sizes = [16, 8], strides = [1, 1]} : vector<16x128xf32> to vector<16x8xf32>
    %42 = vector.extract_strided_slice %7 {offsets = [0, 80], sizes = [16, 8], strides = [1, 1]} : vector<16x128xf32> to vector<16x8xf32>
    %cst_15 = arith.constant dense<0.000000e+00> : vector<16x16xf32>
    %43 = tpu.matmul %40, %41, %cst_15 {dimension_numbers = #tpu.dot_dimension_numbers<[1], [1], [0], [0], [0, 0, 1, 0], [], []>} : vector<16x8xf32>, vector<16x8xf32>, vector<16x16xf32> -> vector<16x16xf32>
    %44 = arith.addf %43, %1 : vector<16x16xf32>
    %cst_16 = arith.constant dense<0xFF800000> : vector<16xf32>
    %45 = vector.multi_reduction <maximumf>, %44, %cst_16 [1] : vector<16x16xf32> to vector<16xf32>
    %46 = vector.shape_cast %45 : vector<16xf32> to vector<16x1xf32>
    %47 = vector.broadcast %46 : vector<16x1xf32> to vector<16x16xf32>
    %48 = arith.subf %44, %47 : vector<16x16xf32>
    %49 = math.exp %48 : vector<16x16xf32>
    %cst_17 = arith.constant dense<0.000000e+00> : vector<16xf32>
    %50 = vector.multi_reduction <add>, %49, %cst_17 [1] : vector<16x16xf32> to vector<16xf32>
    %51 = vector.shape_cast %50 : vector<16xf32> to vector<16x1xf32>
    %52 = tpu.reciprocal %51 {approx = true} : vector<16x1xf32> -> vector<16x1xf32>
    %53 = vector.broadcast %52 : vector<16x1xf32> to vector<16x16xf32>
    %54 = arith.mulf %49, %53 : vector<16x16xf32>
    %cst_18 = arith.constant dense<0.000000e+00> : vector<16x8xf32>
    %55 = tpu.matmul %54, %42, %cst_18 {dimension_numbers = #tpu.dot_dimension_numbers<[1], [0], [0], [1], [0, 0, 1, 1], [], []>} : vector<16x16xf32>, vector<16x8xf32>, vector<16x8xf32> -> vector<16x8xf32>
    %56 = vector.extract_strided_slice %7 {offsets = [0, 24], sizes = [16, 8], strides = [1, 1]} : vector<16x128xf32> to vector<16x8xf32>
    %57 = vector.extract_strided_slice %7 {offsets = [0, 56], sizes = [16, 8], strides = [1, 1]} : vector<16x128xf32> to vector<16x8xf32>
    %58 = vector.extract_strided_slice %7 {offsets = [0, 88], sizes = [16, 8], strides = [1, 1]} : vector<16x128xf32> to vector<16x8xf32>
    %cst_19 = arith.constant dense<0.000000e+00> : vector<16x16xf32>
    %59 = tpu.matmul %56, %57, %cst_19 {dimension_numbers = #tpu.dot_dimension_numbers<[1], [1], [0], [0], [0, 0, 1, 0], [], []>} : vector<16x8xf32>, vector<16x8xf32>, vector<16x16xf32> -> vector<16x16xf32>
    %60 = arith.addf %59, %1 : vector<16x16xf32>
    %cst_20 = arith.constant dense<0xFF800000> : vector<16xf32>
    %61 = vector.multi_reduction <maximumf>, %60, %cst_20 [1] : vector<16x16xf32> to vector<16xf32>
    %62 = vector.shape_cast %61 : vector<16xf32> to vector<16x1xf32>
    %63 = vector.broadcast %62 : vector<16x1xf32> to vector<16x16xf32>
    %64 = arith.subf %60, %63 : vector<16x16xf32>
    %65 = math.exp %64 : vector<16x16xf32>
    %cst_21 = arith.constant dense<0.000000e+00> : vector<16xf32>
    %66 = vector.multi_reduction <add>, %65, %cst_21 [1] : vector<16x16xf32> to vector<16xf32>
    %67 = vector.shape_cast %66 : vector<16xf32> to vector<16x1xf32>
    %68 = tpu.reciprocal %67 {approx = true} : vector<16x1xf32> -> vector<16x1xf32>
    %69 = vector.broadcast %68 : vector<16x1xf32> to vector<16x16xf32>
    %70 = arith.mulf %65, %69 : vector<16x16xf32>
    %cst_22 = arith.constant dense<0.000000e+00> : vector<16x8xf32>
    %71 = tpu.matmul %70, %58, %cst_22 {dimension_numbers = #tpu.dot_dimension_numbers<[1], [0], [0], [1], [0, 0, 1, 1], [], []>} : vector<16x16xf32>, vector<16x8xf32>, vector<16x8xf32> -> vector<16x8xf32>
    %72 = tpu.concatenate %23, %39, %55, %71 in 1 : vector<16x8xf32>, vector<16x8xf32>, vector<16x8xf32>, vector<16x8xf32> -> vector<16x32xf32>
    %c32 = arith.constant 32 : index
    %c0_23 = arith.constant 0 : index
    %73 = vector.load %arg2[%c32, %c0_23] : memref<224x128xbf16, #tpu.memory_space<vmem>>, vector<32x128xbf16>
    %cst_24 = arith.constant dense<0.000000e+00> : vector<16x128xf32>
    %74 = tpu.matmul %72, %73, %cst_24 {dimension_numbers = #tpu.dot_dimension_numbers<[1], [0], [0], [1], [0, 0, 1, 1], [], []>} : vector<16x32xf32>, vector<32x128xbf16>, vector<16x128xf32> -> vector<16x128xf32>
    %75 = vector.extract_strided_slice %74 {offsets = [0, 0], sizes = [16, 32], strides = [1, 1]} : vector<16x128xf32> to vector<16x32xf32>
    %76 = vector.extract_strided_slice %2 {offsets = [2, 0], sizes = [1, 32], strides = [1, 1]} : vector<8x128xf32> to vector<1x32xf32>
    %77 = vector.broadcast %76 : vector<1x32xf32> to vector<16x32xf32>
    %78 = arith.addf %75, %77 : vector<16x32xf32>
    %79 = arith.addf %0, %78 : vector<16x32xf32>
    %80 = vector.extract_strided_slice %2 {offsets = [3, 0], sizes = [1, 32], strides = [1, 1]} : vector<8x128xf32> to vector<1x32xf32>
    %81 = vector.extract_strided_slice %2 {offsets = [4, 0], sizes = [1, 32], strides = [1, 1]} : vector<8x128xf32> to vector<1x32xf32>
    %cst_25 = arith.constant dense<0.000000e+00> : vector<16xf32>
    %82 = vector.multi_reduction <add>, %79, %cst_25 [1] : vector<16x32xf32> to vector<16xf32>
    %83 = vector.shape_cast %82 : vector<16xf32> to vector<16x1xf32>
    %cst_26 = arith.constant 3.200000e+01 : f32
    %84 = vector.broadcast %cst_26 : f32 to vector<16x1xf32>
    %85 = arith.divf %83, %84 : vector<16x1xf32>
    %86 = vector.broadcast %85 : vector<16x1xf32> to vector<16x32xf32>
    %87 = arith.subf %79, %86 : vector<16x32xf32>
    %88 = arith.mulf %87, %87 : vector<16x32xf32>
    %cst_27 = arith.constant dense<0.000000e+00> : vector<16xf32>
    %89 = vector.multi_reduction <add>, %88, %cst_27 [1] : vector<16x32xf32> to vector<16xf32>
    %90 = vector.shape_cast %89 : vector<16xf32> to vector<16x1xf32>
    %cst_28 = arith.constant 0.0322580636 : f32
    %91 = vector.broadcast %cst_28 : f32 to vector<16x1xf32>
    %92 = arith.mulf %90, %91 : vector<16x1xf32>
    %93 = vector.broadcast %85 : vector<16x1xf32> to vector<16x32xf32>
    %94 = arith.subf %79, %93 : vector<16x32xf32>
    %95 = vector.broadcast %80 : vector<1x32xf32> to vector<16x32xf32>
    %96 = arith.mulf %95, %94 : vector<16x32xf32>
    %97 = math.sqrt %92 : vector<16x1xf32>
    %cst_29 = arith.constant 9.99999997E-7 : f32
    %98 = vector.broadcast %cst_29 : f32 to vector<16x1xf32>
    %99 = arith.addf %97, %98 : vector<16x1xf32>
    %100 = vector.broadcast %99 : vector<16x1xf32> to vector<16x32xf32>
    %101 = arith.divf %96, %100 : vector<16x32xf32>
    %102 = vector.broadcast %81 : vector<1x32xf32> to vector<16x32xf32>
    %103 = arith.addf %101, %102 : vector<16x32xf32>
    %c64 = arith.constant 64 : index
    %c0_30 = arith.constant 0 : index
    %104 = vector.load %arg2[%c64, %c0_30] : memref<224x128xbf16, #tpu.memory_space<vmem>>, vector<32x128xbf16>
    %cst_31 = arith.constant dense<0.000000e+00> : vector<16x128xf32>
    %105 = tpu.matmul %103, %104, %cst_31 {dimension_numbers = #tpu.dot_dimension_numbers<[1], [0], [0], [1], [0, 0, 1, 1], [], []>} : vector<16x32xf32>, vector<32x128xbf16>, vector<16x128xf32> -> vector<16x128xf32>
    %106 = vector.extract_strided_slice %2 {offsets = [1, 0], sizes = [1, 128], strides = [1, 1]} : vector<8x128xf32> to vector<1x128xf32>
    %107 = vector.broadcast %106 : vector<1x128xf32> to vector<16x128xf32>
    %108 = arith.addf %105, %107 : vector<16x128xf32>
    %cst_32 = arith.constant 0.000000e+00 : f32
    %109 = vector.broadcast %cst_32 : f32 to vector<16x128xf32>
    %110 = arith.maximumf %108, %109 : vector<16x128xf32>
    %c96 = arith.constant 96 : index
    %c0_33 = arith.constant 0 : index
    %111 = vector.load %arg2[%c96, %c0_33] : memref<224x128xbf16, #tpu.memory_space<vmem>>, vector<128x128xbf16>
    %cst_34 = arith.constant dense<0.000000e+00> : vector<16x128xf32>
    %112 = tpu.matmul %110, %111, %cst_34 {dimension_numbers = #tpu.dot_dimension_numbers<[1], [0], [0], [1], [0, 0, 1, 1], [], []>} : vector<16x128xf32>, vector<128x128xbf16>, vector<16x128xf32> -> vector<16x128xf32>
    %113 = vector.extract_strided_slice %112 {offsets = [0, 0], sizes = [16, 32], strides = [1, 1]} : vector<16x128xf32> to vector<16x32xf32>
    %114 = vector.extract_strided_slice %2 {offsets = [5, 0], sizes = [1, 32], strides = [1, 1]} : vector<8x128xf32> to vector<1x32xf32>
    %115 = vector.broadcast %114 : vector<1x32xf32> to vector<16x32xf32>
    %116 = arith.addf %113, %115 : vector<16x32xf32>
    %117 = arith.addf %103, %116 : vector<16x32xf32>
    %118 = vector.extract_strided_slice %2 {offsets = [6, 0], sizes = [1, 32], strides = [1, 1]} : vector<8x128xf32> to vector<1x32xf32>
    %119 = vector.extract_strided_slice %2 {offsets = [7, 0], sizes = [1, 32], strides = [1, 1]} : vector<8x128xf32> to vector<1x32xf32>
    %cst_35 = arith.constant dense<0.000000e+00> : vector<16xf32>
    %120 = vector.multi_reduction <add>, %117, %cst_35 [1] : vector<16x32xf32> to vector<16xf32>
    %121 = vector.shape_cast %120 : vector<16xf32> to vector<16x1xf32>
    %cst_36 = arith.constant 3.200000e+01 : f32
    %122 = vector.broadcast %cst_36 : f32 to vector<16x1xf32>
    %123 = arith.divf %121, %122 : vector<16x1xf32>
    %124 = vector.broadcast %123 : vector<16x1xf32> to vector<16x32xf32>
    %125 = arith.subf %117, %124 : vector<16x32xf32>
    %126 = arith.mulf %125, %125 : vector<16x32xf32>
    %cst_37 = arith.constant dense<0.000000e+00> : vector<16xf32>
    %127 = vector.multi_reduction <add>, %126, %cst_37 [1] : vector<16x32xf32> to vector<16xf32>
    %128 = vector.shape_cast %127 : vector<16xf32> to vector<16x1xf32>
    %cst_38 = arith.constant 0.0322580636 : f32
    %129 = vector.broadcast %cst_38 : f32 to vector<16x1xf32>
    %130 = arith.mulf %128, %129 : vector<16x1xf32>
    %131 = vector.broadcast %123 : vector<16x1xf32> to vector<16x32xf32>
    %132 = arith.subf %117, %131 : vector<16x32xf32>
    %133 = vector.broadcast %118 : vector<1x32xf32> to vector<16x32xf32>
    %134 = arith.mulf %133, %132 : vector<16x32xf32>
    %135 = math.sqrt %130 : vector<16x1xf32>
    %cst_39 = arith.constant 9.99999997E-7 : f32
    %136 = vector.broadcast %cst_39 : f32 to vector<16x1xf32>
    %137 = arith.addf %135, %136 : vector<16x1xf32>
    %138 = vector.broadcast %137 : vector<16x1xf32> to vector<16x32xf32>
    %139 = arith.divf %134, %138 : vector<16x32xf32>
    %140 = vector.broadcast %119 : vector<1x32xf32> to vector<16x32xf32>
    %141 = arith.addf %139, %140 : vector<16x32xf32>
    %c0_40 = arith.constant 0 : index
    %c0_41 = arith.constant 0 : index
    %142 = vector.load %arg4[%c0_40, %c0_41] : memref<16x32xf32, #tpu.memory_space<vmem>>, vector<16x32xf32>
    tpu.vector_store %arg4[%c0_40, %c0_41], %141 {strides = array<i32>} : memref<16x32xf32, #tpu.memory_space<vmem>>, vector<16x32xf32>,
    return
  }
}

</mosaic_0001>

<bundles_post_ra>
// kernel: tpu_custom_call.1
= control target key start
LH: loop header
LB: loop body
LE: loop exit
PB: predicated region body
PF: predicated region fallthrough
CT: control target
= control target key end

     0   :  { %9 = vsyncpa [#allocation3], 0  ;;  %s2074_s0 = inlined_call_operand.hbm [shape: f32[16,32], index: 0, kind: input, shape index: {}]   ;;  %s2075_s1 = inlined_call_operand.hbm [shape: f32[16,16], index: 1, kind: input, shape index: {}]   ;;  %s2076_s2 = inlined_call_operand.hbm [shape: bf16[224,128], index: 2, kind: input, shape index: {}]   ;;  %s2077_s3 = inlined_call_operand.vmem [shape: f32[8,128], index: 3, kind: input, shape index: {}]   ;;  %s2078_s4 = inlined_call_operand.hbm [shape: f32[16,32], index: 4, kind: output, shape index: {}]  }
   0x1   :  { %10 = vsyncpa [#allocation6], 0 }
   0x2   :  { %11 = vsyncpa [#allocation4], 0  ;;  %s1800_s15 = smov [#allocation5]   ;;  %s1801_s17 = smov [#allocation2]  }
   0x3   :  { %s29_s16 = sshll.u32 %s1800_s15, 4  ;;  %s17_s18 = sshll.u32 %s1801_s17, 4  ;;  %s30_s16 = int_to_ptr.vmem [resolvable:$true] %s29_s16  ;;  %s1845_s18 = int_to_ptr.vmem [resolvable:$true] %s17_s18 }
   0x4   :  { %s1706_s21 = scalar_lea.hbm %s2075_s1, 256 }
   0x5   :  { %p1707_p0 = scmp.ne.s32.totalorder %s2075_s1, %s1706_s21  ;;  %p1710_p1 = scmp.lt.u32.totalorder %s1706_s21, %s2075_s1 }
   0x7   :  { %p1712_p2 = pnand %p1710_p1, %p1707_p0 }
   0x9   :  { %1715 = shalt.err (!%p1712_p2)
}
   0xa   :  { %s1716_s26 = scalar_lea.vmem %s30_s16, 256  ;;  %p1721_p4 = scmp.lt.s32.totalorder %s30_s16, %s30_s16 }
   0xb   :  { %p1717_p3 = scmp.ne.s32.totalorder %s30_s16, %s1716_s26  ;;  %p1722_p5 = scmp.lt.s32.totalorder %s1716_s26, %s1716_s26 }
   0xd   :  { %p1723_p6 = por %p1722_p5, %p1721_p4 }
   0xf   :  { %p1724_p7 = pnand %p1723_p6, %p1717_p3 }
  0x11   :  { %1727 = shalt.err (!%p1724_p7)
}
  0x12   :  { %s1802_s27 = smov 128   ;;  %s1803_s28 = smov 8  }
  0x13   :  { %35 = dma.hbm_to_vmem [thread:$0]  %s2075_s1, 256, %s30_s16, [#allocation6], %s1802_s27, %s1802_s27, %s1803_s28  }
  0x14   :  { %s1728_s7 = scalar_lea.hbm %s2074_s0, 256 }
  0x15   :  { %p1729_p8 = scmp.ne.s32.totalorder %s2074_s0, %s1728_s7  ;;  %p1732_p9 = scmp.lt.u32.totalorder %s1728_s7, %s2074_s0 }
  0x17   :  { %p1734_p10 = pnand %p1732_p9, %p1729_p8 }
  0x19   :  { %1737 = shalt.err (!%p1734_p10)
}
  0x1a   :  { %s1738_s12 = scalar_lea.vmem %s1845_s18, 256  ;;  %p1743_p12 = scmp.lt.s32.totalorder %s1845_s18, %s1845_s18 }
  0x1b   :  { %p1739_p11 = scmp.ne.s32.totalorder %s1845_s18, %s1738_s12  ;;  %p1744_p13 = scmp.lt.s32.totalorder %s1738_s12, %s1738_s12 }
  0x1d   :  { %p1745_p0 = por %p1744_p13, %p1743_p12 }
  0x1f   :  { %p1746_p1 = pnand %p1745_p0, %p1739_p11 }
  0x21   :  { %1749 = shalt.err (!%p1746_p1)
}
  0x22   :  { %23 = dma.hbm_to_vmem [thread:$0]  %s2074_s0, 256, %s1845_s18, [#allocation3], %s1802_s27, %s1802_s27, %s1803_s28  }
  0x23   :  { %s1804_s14 = smov [#allocation7]   ;;  %s1750_s19 = scalar_lea.hbm %s2076_s2, 1792 }
  0x24   :  { %s41_s15 = sshll.u32 %s1804_s14, 4  ;;  %p1751_p2 = scmp.ne.s32.totalorder %s2076_s2, %s1750_s19  ;;  %s42_s15 = int_to_ptr.vmem [resolvable:$true] %s41_s15 }
  0x25   :  { %p1754_p3 = scmp.lt.u32.totalorder %s1750_s19, %s2076_s2 }
  0x27   :  { %p1756_p4 = pnand %p1754_p3, %p1751_p2 }
  0x29   :  { %1759 = shalt.err (!%p1756_p4)
}
  0x2a   :  { %s1760_s24 = scalar_lea.vmem %s42_s15, 1792  ;;  %p1765_p6 = scmp.lt.s32.totalorder %s42_s15, %s42_s15 }
  0x2b   :  { %p1761_p5 = scmp.ne.s32.totalorder %s42_s15, %s1760_s24  ;;  %p1766_p7 = scmp.lt.s32.totalorder %s1760_s24, %s1760_s24 }
  0x2d   :  { %p1767_p8 = por %p1766_p7, %p1765_p6 }
  0x2f   :  { %p1768_p9 = pnand %p1767_p8, %p1761_p5 }
  0x31   :  { %1771 = shalt.err (!%p1768_p9)
}
  0x32   :  { %s1805_s0 = smov 64   ;;  %s1806_s18 = smov 4  }
  0x33   :  { %47 = dma.hbm_to_vmem [thread:$0]  %s2076_s2, 1792, %s42_s15, [#allocation6], %s1805_s0, %s1805_s0, %s1806_s18  }
  0x34   :  { %1794 = dma.done.wait [#allocation3], 256  }
  0x35   :  { %1795 = vsyncadd [#allocation3], 4294967040 }
  0x36   :  { %1796 = dma.done.wait [#allocation6], 2048  }
  0x37   :  { %1797 = vsyncadd [#allocation6], 4294965248  ;;  %v1644_v0 = vld [vmem:[#allocation7] sm:$0xff]   ;;  %vm85_vm0 = vcmask 261120   ;;  %v1645_v1 = vld [vmem:[#allocation7 + $0x8] sm:$0xff]   ;;  %v69_v4 = vlaneseq  ;;  %vm141_vm1 = vcmask 64512  }
  0x38   :  { %1448 = vmatprep.subr.bf16.mxu1 %v1644_v0  ;;  %v1896_v2 = vld [vmem:[#allocation2] sm:$0xff]  ;;  %v1900_v3 = vld [vmem:[#allocation2 + $0x8] sm:$0xff]  ;;  %s1807_s30 = smov 80   ;;  %s1809_s5 = smov 120   ;;  %vm1932_vm2 = vmpackc.low %vm141_vm1, %vm141_vm1  ;;  %vm225_vm3 = vcmask 130048   ;;  %vm963_vm4 = vcmask 195584  }
  0x39   :  { %1449 = vmatpush3.bf16.msra.mxu1 %v1644_v0  ;;  %1452 = vmatprep.mubr.msk.f32.mxu1 %vm85_vm0, %v1896_v2  ;;  %v1904_v5 = vshrl.u32 %v69_v4, 7  ;;  %v1910_v7 = vld [vmem:[%s2077_s3] sm:$0xff]  ;;  %s1808_s3 = smov 96   ;;  %s1810_s6 = smov 88   ;;  %v1954_v35 = vld [vmem:[#allocation5 + $0x8] sm:$0xff]  ;;  %v1956_v37 = vld [vmem:[#allocation5] sm:$0xff] }
  0x3a   :  { %1450 = vmatprep.subr.bf16.mxu1 %v1645_v1  ;;  %s1811_s7 = smov 112   ;;  %s1812_s8 = smov 72  }
  0x3b   :  { %v71_v6 = vsub.s32 0, %v1904_v5  ;;  %s1813_s9 = smov 104   ;;  %s1814_s10 = smov 48  }
  0x3c   :  { %s1815_s11 = smov 56   ;;  %s1816_s12 = smov 40  }
  0x3d   :  { %1451 = vmatpush3.bf16.msra.mxu1 %v1645_v1  ;;  %v72_v8 = vrot.slane %v1910_v7, %v71_v6  ;;  %s1817_s1 = smov 16   ;;  %s1818_s13 = smov 24  }
  0x3e   :  { %s1819_s14 = smov [#allocation8]  }
  0x3f   :  { %s1337_s15 = sshll.u32 %s1819_s14, 4  ;;  %s1338_s15 = int_to_ptr.vmem [resolvable:$true] %s1337_s15 }
  0x40   :  { %1453 = vmatmul.mubr.msk.f32.vlgmr.msra.gmra.mrb[0].mxu1 %vm85_vm0, %v1900_v3  ;;  %s1772_s16 = scalar_lea.vmem %s1338_s15, 256  ;;  %p1777_p11 = scmp.lt.s32.totalorder %s1338_s15, %s1338_s15 }
  0x41   :  { %p1773_p10 = scmp.ne.s32.totalorder %s1338_s15, %s1772_s16  ;;  %p1778_p12 = scmp.lt.s32.totalorder %s1772_s16, %s1772_s16 }
  0x43   :  { %p1779_p13 = por %p1778_p12, %p1777_p11 }
  0x45   :  { %p1780_p0 = pnand %p1779_p13, %p1773_p10 }
 0x113   :  { %v1454_v9 = vpop.f32.mrb[0].mxu1 }
 0x114   :  { %v1913_v10 = vadd.f32 %v1454_v9, %v72_v8  ;;  %v126_v11 = vpop.f32.mrb[1].mxu1 }
 0x115   :  { %v1915_v12 = vadd.f32 %v126_v11, %v72_v8 }
 0x117   :  { %1459 = vmatprep.mubr.msk.f32.mxu1 %vm141_vm1, %v1915_v12  ;;  %v1921_v13 = vpack.i.bf16 %v1913_v10, %v1915_v12 }
 0x119   :  { %1615 = vrot.lane.b32.xlu1 %v1921_v13, %s1807_s30  ;;  %1605 = vrot.lane.b32.xlu0 %v1921_v13, %s1808_s3 }
 0x11d   :  { %335 = vrot.lane.b32.xlu1 %v1915_v12, %s1809_s5  ;;  %1610 = vrot.lane.b32.xlu0 %v1921_v13, %s1810_s6 }
 0x121   :  { %535 = vrot.lane.b32.xlu1 %v1915_v12, %s1811_s7  ;;  %337 = vrot.lane.b32.xlu0 %v1913_v10, %s1809_s5 }
 0x125   :  { %537 = vrot.lane.b32.xlu0 %v1913_v10, %s1811_s7 }
 0x18b   :  { %v1606_v14 = vpop.permute.xlu0 %1605  ;;  %v1616_v22 = vpop.permute.xlu1 %1615 }
 0x18c   :  { %v1608_v15 = vunpack.i.h.bf16 %v1606_v14  ;;  %v1607_v16 = vunpack.i.l.bf16 %v1606_v14  ;;  %v1618_v24 = vunpack.i.h.bf16 %v1616_v22  ;;  %v1617_v25 = vunpack.i.l.bf16 %v1616_v22 }
 0x18e   :  { %v1544_v18 = vpack.c.bf16 %v1608_v15, %v1607_v16  ;;  %v1564_v26 = vpack.c.bf16 %v1618_v24, %v1617_v25 }
 0x18f   :  { %v1611_v19 = vpop.permute.xlu0 %1610  ;;  %v336_v27 = vpop.permute.xlu1 %335 }
 0x190   :  { %v1613_v20 = vunpack.i.h.bf16 %v1611_v19  ;;  %v1612_v21 = vunpack.i.l.bf16 %v1611_v19  ;;  %1546 = vmatprep.subr.msk.bf16.mxu1 %vm1932_vm2, %v1544_v18 }
 0x191   :  { %1549 = vmatpush3.bf16.xpose.msk.msra.mxu1 %vm1932_vm2, %v1544_v18 }
 0x192   :  { %v1554_v23 = vpack.c.bf16 %v1613_v20, %v1612_v21 }
 0x193   :  { %v338_v28 = vpop.permute.xlu0 %337  ;;  %v536_v29 = vpop.permute.xlu1 %535 }
 0x194   :  { %1556 = vmatprep.subr.msk.bf16.mxu1 %vm1932_vm2, %v1554_v23 }
 0x197   :  { %v538_v30 = vpop.permute.xlu0 %537 }
 0x198   :  { %1460 = vmatmul.mubr.msk.f32.vlgmr.msra.gmra.mrb[2].mxu1 %vm141_vm1, %v1913_v10 }
 0x199   :  { %1559 = vmatpush3.bf16.xpose.msk.msra.mxu1 %vm1932_vm2, %v1554_v23  ;;  %1473 = vmatprep.mubr.msk.f32.mxu1 %vm141_vm1, %v336_v27 }
 0x19a   :  { %1566 = vmatprep.subr.msk.bf16.mxu1 %vm1932_vm2, %v1564_v26 }
 0x1a0   :  { %1474 = vmatmul.mubr.msk.f32.vlgmr.msra.gmra.mrb[4].mxu1 %vm141_vm1, %v338_v28 }
 0x1a1   :  { %1569 = vmatpush3.bf16.xpose.msk.msra.mxu1 %vm1932_vm2, %v1564_v26  ;;  %1487 = vmatprep.mubr.msk.f32.mxu1 %vm141_vm1, %v536_v29 }
 0x1a8   :  { %1488 = vmatmul.mubr.msk.f32.vlgmr.msra.gmra.mrb[6].mxu1 %vm141_vm1, %v538_v30 }
 0x26b   :  { %v1461_v31 = vpop.f32.mrb[2].mxu1 }
 0x26c   :  { %v216_v32 = vpop.f32.mrb[3].mxu1  ;;  %v222_v54 = vadd.f32 %v1461_v31, %v1954_v35 }
 0x26d   :  { %v217_v53 = vadd.f32 %v216_v32, %v1956_v37 }
 0x26e   :  { %v229_v58 = vsel %vm225_vm3, %v222_v54, -inf }
 0x26f   :  { %v226_v56 = vsel %vm225_vm3, %v217_v53, -inf }
 0x273   :  { %v1475_v33 = vpop.f32.mrb[4].mxu1 }
 0x274   :  { %v417_v34 = vpop.f32.mrb[5].mxu1  ;;  %v423_v55 = vadd.f32 %v1475_v33, %v1954_v35 }
 0x275   :  { %v418_v57 = vadd.f32 %v417_v34, %v1956_v37 }
 0x276   :  { %v429_v59 = vsel %vm225_vm3, %v423_v55, -inf }
 0x277   :  { %v426_v60 = vsel %vm225_vm3, %v418_v57, -inf }
 0x27b   :  { %v1489_v36 = vpop.f32.mrb[6].mxu1 }
 0x27c   :  { %v623_v38 = vadd.f32 %v1489_v36, %v1954_v35  ;;  %v617_v39 = vpop.f32.mrb[7].mxu1 }
 0x27d   :  { %v618_v40 = vadd.f32 %v617_v39, %v1956_v37 }
 0x27e   :  { %v629_v41 = vsel %vm225_vm3, %v623_v38, -inf }
 0x27f   :  { %630 = vmax.xlane.f32.xlu0 %v629_v41  ;;  %v626_v42 = vsel %vm225_vm3, %v618_v40, -inf }
 0x280   :  { %627 = vmax.xlane.f32.xlu1 %v626_v42 }
 0x30c   :  { %v631_v43 = vpop.xlane.xlu0 %630 }
 0x30d   :  { %v633_v44 = vsub.f32 %v623_v38, %v631_v43  ;;  %v628_v45 = vpop.xlane.xlu1 %627 }
 0x30e   :  { %v632_v46 = vsub.f32 %v618_v40, %v628_v45 }
 0x30f   :  { %v636_v47 = vmul.f32 1.442695, %v633_v44 }
 0x310   :  { %v634_v48 = vmul.f32 1.442695, %v632_v46 }
 0x311   :  { %1658 = vpow2.f32 %v636_v47 }
 0x312   :  { %1660 = vpow2.f32 %v634_v48 }
 0x31b   :  { %v1659_v49 = vpop.eup %1658 }
 0x31c   :  { %v1661_v50 = vpop.eup %1660  ;;  %v641_v51 = vsel %vm225_vm3, %v1659_v49, 0.0 }
 0x31d   :  { %642 = vadd.xlane.f32.xlu1 %v641_v51  ;;  %v638_v52 = vsel %vm225_vm3, %v1661_v50, 0.0 }
 0x31e   :  { %639 = vadd.xlane.f32.xlu0 %v638_v52 }
 0x32e   :  { %1625 = vrot.lane.b32.xlu1 %v1921_v13, %s1812_s8 }
 0x332   :  { %735 = vrot.lane.b32.xlu1 %v1915_v12, %s1813_s9 }
 0x334   :  { %1620 = vrot.lane.b32.xlu0 %v1921_v13, %s1814_s10 }
 0x338   :  { %737 = vrot.lane.b32.xlu0 %v1913_v10, %s1813_s9 }
 0x356   :  { %227 = vmax.xlane.f32.xlu1 %v226_v56 }
 0x357   :  { %230 = vmax.xlane.f32.xlu0 %v229_v58 }
 0x35a   :  { %430 = vmax.xlane.f32.xlu1 %v429_v59 }
 0x35b   :  { %427 = vmax.xlane.f32.xlu0 %v426_v60 }
 0x3aa   :  { %v643_v61 = vpop.xlane.xlu1 %642 }
 0x3ab   :  { %1662 = vrcp.f32 %v643_v61  ;;  %v640_v62 = vpop.xlane.xlu0 %639 }
 0x3ac   :  { %1664 = vrcp.f32 %v640_v62 }
 0x3ae   :  { %v1626_v63 = vpop.permute.xlu1 %1625 }
 0x3af   :  { %v1621_v0 = vpop.permute.xlu0 %1620  ;;  %v1628_v1 = vunpack.i.h.bf16 %v1626_v63  ;;  %v1627_v4 = vunpack.i.l.bf16 %v1626_v63 }
 0x3b0   :  { %v1623_v6 = vunpack.i.h.bf16 %v1621_v0  ;;  %v1622_v8 = vunpack.i.l.bf16 %v1621_v0 }
 0x3b1   :  { %v1574_v10 = vpack.c.bf16 %v1628_v1, %v1627_v4 }
 0x3b2   :  { %v1570_v9 = vpack.c.bf16 %v1623_v6, %v1622_v8  ;;  %v736_v16 = vpop.permute.xlu1 %735 }
 0x3b3   :  { %v738_v18 = vpop.permute.xlu0 %737 }
 0x3b4   :  { %1571 = vmatprep.subr.bf16.mxu1 %v1570_v9 }
 0x3b5   :  { %v1663_v11 = vpop.eup %1662  ;;  %1573 = vmatpush3.bf16.msra.mxu1 %v1570_v9 }
 0x3b6   :  { %v1665_v12 = vpop.eup %1664  ;;  %1576 = vmatprep.subr.msk.bf16.mxu1 %vm1932_vm2, %v1574_v10  ;;  %v647_v15 = vmul.f32 %v1663_v11, %v1659_v49 }
 0x3b7   :  { %v646_v14 = vmul.f32 %v1665_v12, %v1661_v50 }
 0x3b9   :  { %1494 = vmatprep.mubr.msk.f32.mxu1 %vm225_vm3, %v646_v14 }
 0x3ba   :  { %1495 = vmatmul.mubr.msk.f32.vlgmr.msra.gmra.mrb[8].mxu1 %vm225_vm3, %v647_v15 }
 0x3bb   :  { %1501 = vmatprep.mubr.msk.f32.mxu1 %vm141_vm1, %v736_v16 }
 0x3be   :  { %1579 = vmatpush3.bf16.xpose.msk.msra.mxu1 %vm1932_vm2, %v1574_v10 }
 0x3c5   :  { %1502 = vmatmul.mubr.msk.f32.vlgmr.msra.gmra.mrb[10].mxu1 %vm141_vm1, %v738_v18 }
 0x3e3   :  { %v228_v19 = vpop.xlane.xlu1 %227 }
 0x3e4   :  { %v231_v20 = vpop.xlane.xlu0 %230  ;;  %v232_v22 = vsub.f32 %v217_v53, %v228_v19 }
 0x3e5   :  { %v233_v21 = vsub.f32 %v222_v54, %v231_v20 }
 0x3e6   :  { %v234_v29 = vmul.f32 1.442695, %v232_v22 }
 0x3e7   :  { %v431_v23 = vpop.xlane.xlu1 %430  ;;  %v236_v26 = vmul.f32 1.442695, %v233_v21 }
 0x3e8   :  { %v428_v24 = vpop.xlane.xlu0 %427  ;;  %v433_v27 = vsub.f32 %v423_v55, %v431_v23 }
 0x3e9   :  { %v432_v30 = vsub.f32 %v418_v57, %v428_v24  ;;  %1666 = vpow2.f32 %v236_v26 }
 0x3ea   :  { %v436_v17 = vmul.f32 1.442695, %v433_v27  ;;  %1668 = vpow2.f32 %v234_v29  ;;  %v1646_v29 = vld [vmem:[#allocation7 + $0x10] sm:$0xff]  }
 0x3eb   :  { %v434_v31 = vmul.f32 1.442695, %v432_v30  ;;  %v1647_v30 = vld [vmem:[#allocation7 + $0x18] sm:$0xff]  }
 0x3ec   :  { %1670 = vpow2.f32 %v436_v17 }
 0x3ed   :  { %1672 = vpow2.f32 %v434_v31 }
 0x3f3   :  { %v1991_v39 = vpop.eup %1666 }
 0x3f4   :  { %v1669_v41 = vpop.eup %1668  ;;  %v241_v42 = vsel %vm225_vm3, %v1991_v39, 0.0 }
 0x3f6   :  { %v1996_v43 = vpop.eup %1670 }
 0x3f7   :  { %v1673_v44 = vpop.eup %1672 }
 0x3f8   :  { %v438_v45 = vsel %vm225_vm3, %v1673_v44, 0.0 }
 0x48d   :  { %v1984_v25 = vpop.f32.mrb[8].mxu1 }
 0x48e   :  { %v1986_v28 = vpop.f32.mrb[9].mxu1 }
 0x498   :  { %v1503_v32 = vpop.f32.mrb[10].mxu1 }
 0x499   :  { %v823_v33 = vadd.f32 %v1503_v32, %v1954_v35  ;;  %v817_v34 = vpop.f32.mrb[11].mxu1  ;;  %v238_v35 = vsel %vm225_vm3, %v1669_v41, 0.0 }
 0x49a   :  { %v818_v36 = vadd.f32 %v817_v34, %v1956_v37  ;;  %v441_v37 = vsel %vm225_vm3, %v1996_v43, 0.0 }
 0x49b   :  { %v829_v38 = vsel %vm225_vm3, %v823_v33, -inf }
 0x49c   :  { %830 = vmax.xlane.f32.xlu1 %v829_v38  ;;  %v826_v40 = vsel %vm225_vm3, %v818_v36, -inf }
 0x49d   :  { %827 = vmax.xlane.f32.xlu0 %v826_v40 }
 0x4a0   :  { %242 = vadd.xlane.f32.xlu1 %v241_v42 }
 0x4a1   :  { %239 = vadd.xlane.f32.xlu0 %v238_v35 }
 0x4a4   :  { %442 = vadd.xlane.f32.xlu1 %v441_v37 }
 0x4a5   :  { %439 = vadd.xlane.f32.xlu0 %v438_v45 }
 0x529   :  { %v831_v46 = vpop.xlane.xlu1 %830 }
 0x52a   :  { %v833_v47 = vsub.f32 %v823_v33, %v831_v46  ;;  %v828_v48 = vpop.xlane.xlu0 %827  ;;  %v1033_v46 = vsub.s32 2, %v1904_v5 }
 0x52b   :  { %v832_v49 = vsub.f32 %v818_v36, %v828_v48 }
 0x52c   :  { %v836_v50 = vmul.f32 1.442695, %v833_v47  ;;  %v1034_v47 = vrot.slane %v1910_v7, %v1033_v46 }
 0x52d   :  { %v834_v51 = vmul.f32 1.442695, %v832_v49  ;;  %v243_v59 = vpop.xlane.xlu1 %242 }
 0x52e   :  { %1674 = vpow2.f32 %v836_v50  ;;  %v240_v52 = vpop.xlane.xlu0 %239 }
 0x52f   :  { %1676 = vpow2.f32 %v834_v51 }
 0x530   :  { %1678 = vrcp.f32 %v240_v52 }
 0x531   :  { %v443_v60 = vpop.xlane.xlu1 %442  ;;  %1680 = vrcp.f32 %v243_v59 }
 0x532   :  { %v440_v61 = vpop.xlane.xlu0 %439 }
 0x533   :  { %1682 = vrcp.f32 %v440_v61 }
 0x534   :  { %1684 = vrcp.f32 %v443_v60 }
 0x538   :  { %v1675_v53 = vpop.eup %1674 }
 0x539   :  { %v1677_v54 = vpop.eup %1676  ;;  %v841_v55 = vsel %vm225_vm3, %v1675_v53, 0.0 }
 0x53a   :  { %842 = vadd.xlane.f32.xlu1 %v841_v55  ;;  %v838_v56 = vsel %vm225_vm3, %v1677_v54, 0.0  ;;  %v1679_v57 = vpop.eup %1678 }
 0x53b   :  { %839 = vadd.xlane.f32.xlu0 %v838_v56  ;;  %v246_v58 = vmul.f32 %v1679_v57, %v1669_v41  ;;  %v1681_v12 = vpop.eup %1680 }
 0x53c   :  { %v247_v18 = vmul.f32 %v1681_v12, %v1991_v39  ;;  %v1656_v12 = vld [vmem:[#allocation7 + $0x60] sm:$0xff]  }
 0x53d   :  { %1466 = vmatprep.mubr.msk.f32.mxu0 %vm225_vm3, %v246_v58 }
 0x54b   :  { %1635 = vrot.lane.b32.xlu1 %v1921_v13, %s1815_s11 }
 0x54f   :  { %1640 = vrot.lane.b32.xlu1 %v1921_v13, %s1816_s12 }
 0x551   :  { %1630 = vrot.lane.b32.xlu0 %v1921_v13, %s1805_s0  ;;  %v1683_v13 = vpop.eup %1682 }
 0x552   :  { %v1685_v19 = vpop.eup %1684  ;;  %v446_v20 = vmul.f32 %v1683_v13, %v1673_v44 }
 0x553   :  { %v447_v23 = vmul.f32 %v1685_v19, %v1996_v43 }
 0x5c7   :  { %v843_v62 = vpop.xlane.xlu1 %842 }
 0x5c8   :  { %v840_v63 = vpop.xlane.xlu0 %839 }
 0x5c9   :  { %1686 = vrcp.f32 %v840_v63 }
 0x5ca   :  { %1688 = vrcp.f32 %v843_v62 }
 0x5cb   :  { %v1636_v0 = vpop.permute.xlu1 %1635 }
 0x5cc   :  { %v1631_v1 = vpop.permute.xlu0 %1630  ;;  %v1638_v4 = vunpack.i.h.bf16 %v1636_v0  ;;  %v1637_v6 = vunpack.i.l.bf16 %v1636_v0  ;;  %v1648_v0 = vld [vmem:[#allocation7 + $0x20] sm:$0xff]  }
 0x5cd   :  { %v1633_v8 = vunpack.i.h.bf16 %v1631_v1  ;;  %v1632_v9 = vunpack.i.l.bf16 %v1631_v1  ;;  %v1649_v1 = vld [vmem:[#allocation7 + $0x28] sm:$0xff]   ;;  %1518 = vmatprep.subr.bf16.mxu1 %v1648_v0 }
 0x5ce   :  { %v1560_v14 = vpack.c.bf16 %v1638_v4, %v1637_v6  ;;  %1519 = vmatpush3.bf16.msra.mxu1 %v1648_v0  ;;  %v1650_v4 = vld [vmem:[#allocation7 + $0x30] sm:$0xff]   ;;  %v1651_v6 = vld [vmem:[#allocation7 + $0x38] sm:$0xff]  }
 0x5cf   :  { %v1641_v10 = vpop.permute.xlu1 %1640  ;;  %v1550_v11 = vpack.c.bf16 %v1633_v8, %v1632_v9  ;;  %1520 = vmatprep.subr.bf16.mxu1 %v1649_v1  ;;  %v1652_v8 = vld [vmem:[#allocation7 + $0x40] sm:$0xff]   ;;  %v1653_v9 = vld [vmem:[#allocation7 + $0x48] sm:$0xff]  }
 0x5d0   :  { %v1643_v15 = vunpack.i.h.bf16 %v1641_v10  ;;  %v1642_v16 = vunpack.i.l.bf16 %v1641_v10  ;;  %v1654_v10 = vld [vmem:[#allocation7 + $0x50] sm:$0xff]  }
 0x5d1   :  { %1551 = vmatprep.subr.bf16.mxu0 %v1550_v11 }
 0x5d2   :  { %1553 = vmatpush3.bf16.msra.mxu0 %v1550_v11  ;;  %v1580_v22 = vpack.c.bf16 %v1643_v15, %v1642_v16  ;;  %1521 = vmatpush3.bf16.msra.mxu1 %v1649_v1  ;;  %v1655_v11 = vld [vmem:[#allocation7 + $0x58] sm:$0xff]  }
 0x5d3   :  { %1561 = vmatprep.subr.bf16.mxu0 %v1560_v14  ;;  %v1687_v21 = vpop.eup %1686 }
 0x5d4   :  { %v1689_v24 = vpop.eup %1688  ;;  %v846_v26 = vmul.f32 %v1687_v21, %v1677_v54 }
 0x5d5   :  { %1467 = vmatmul.mubr.msk.f32.vlgmr.msra.gmra.mrb[0].mxu0 %vm225_vm3, %v247_v18  ;;  %v847_v27 = vmul.f32 %v1689_v24, %v1675_v53 }
 0x5d6   :  { %1563 = vmatpush3.bf16.msra.mxu0 %v1560_v14  ;;  %1480 = vmatprep.mubr.msk.f32.mxu0 %vm225_vm3, %v446_v20 }
 0x5d7   :  { %1581 = vmatprep.subr.bf16.mxu0 %v1580_v22 }
 0x5d9   :  { %1481 = vmatmul.mubr.msk.f32.vlgmr.msra.gmra.mrb[2].mxu0 %vm225_vm3, %v447_v23 }
 0x5da   :  { %1583 = vmatpush3.bf16.msra.mxu0 %v1580_v22  ;;  %1508 = vmatprep.mubr.msk.f32.mxu0 %vm225_vm3, %v846_v26 }
 0x5db   :  { %1511 = vmatprep.subr.bf16.mxu0 %v1646_v29 }
 0x5dd   :  { %1509 = vmatmul.mubr.msk.f32.vlgmr.msra.gmra.mrb[4].mxu0 %vm225_vm3, %v847_v27 }
 0x5de   :  { %1512 = vmatpush3.bf16.msra.mxu0 %v1646_v29 }
 0x5df   :  { %1513 = vmatprep.subr.bf16.mxu0 %v1647_v30 }
 0x5e2   :  { %1514 = vmatpush3.bf16.msra.mxu0 %v1647_v30  ;;  %v1062_v30 = vsub.s32 3, %v1904_v5 }
 0x5e3   :  { %1525 = vmatprep.subr.bf16.mxu0 %v1650_v4 }
 0x6a8   :  { %v1468_v17 = vpop.f32.mrb[0].mxu0 }
 0x6a9   :  { %v326_v31 = vpop.f32.mrb[1].mxu0 }
 0x6ac   :  { %v1482_v32 = vpop.f32.mrb[2].mxu0 }
 0x6ad   :  { %939 = vrot.lane.b32.xlu1 %v1482_v32, %s1803_s28  ;;  %v526_v33 = vpop.f32.mrb[3].mxu0  ;;  %v1063_v32 = vrot.slane %v1910_v7, %v1062_v30 }
 0x6ae   :  { %937 = vrot.lane.b32.xlu0 %v526_v33, %s1803_s28  ;;  %v1088_v33 = vsub.s32 4, %v1904_v5 }
 0x6b0   :  { %v1510_v34 = vpop.f32.mrb[4].mxu0 }
 0x6b1   :  { %947 = vrot.lane.b32.xlu1 %v1984_v25, %s1817_s1  ;;  %v926_v36 = vpop.f32.mrb[5].mxu0 }
 0x6b2   :  { %945 = vrot.lane.b32.xlu0 %v1986_v28, %s1817_s1 }
 0x6b5   :  { %955 = vrot.lane.b32.xlu1 %v1510_v34, %s1818_s13 }
 0x6b6   :  { %953 = vrot.lane.b32.xlu0 %v926_v36, %s1818_s13  ;;  %v1089_v36 = vrot.slane %v1910_v7, %v1088_v33 }
 0x71f   :  { %v940_v38 = vpop.permute.xlu1 %939 }
 0x720   :  { %v938_v39 = vpop.permute.xlu0 %937  ;;  %v960_v35 = vsel %vm141_vm1, %v1468_v17, %v940_v38 }
 0x721   :  { %v959_v42 = vsel %vm141_vm1, %v326_v31, %v938_v39 }
 0x723   :  { %v948_v40 = vpop.permute.xlu1 %947 }
 0x724   :  { %v946_v41 = vpop.permute.xlu0 %945  ;;  %v962_v25 = vsel %vm225_vm3, %v960_v35, %v948_v40 }
 0x725   :  { %v961_v44 = vsel %vm225_vm3, %v959_v42, %v946_v41 }
 0x727   :  { %v956_v43 = vpop.permute.xlu1 %955 }
 0x728   :  { %v954_v37 = vpop.permute.xlu0 %953  ;;  %v965_v28 = vsel %vm963_vm4, %v962_v25, %v956_v43 }
 0x729   :  { %v964_v45 = vsel %vm963_vm4, %v961_v44, %v954_v37  ;;  %v1657_v44 = vld [vmem:[#allocation7 + $0x68] sm:$0xff]   ;;  %v1098_v37 = vsub.s32 1, %v1904_v5 }
 0x72a   :  { %1515 = vmatprep.mubr.msk.f32.mxu0 %vm85_vm0, %v964_v45 }
 0x72b   :  { %1516 = vmatmul.mubr.msk.f32.vlgmr.msra.gmra.mrb[6].mxu0 %vm85_vm0, %v965_v28  ;;  %v1099_v25 = vrot.slane %v1910_v7, %v1098_v37 }
 0x72c   :  { %1526 = vmatpush3.bf16.msra.mxu0 %v1650_v4 }
 0x72d   :  { %1527 = vmatprep.subr.bf16.mxu0 %v1651_v6 }
 0x730   :  { %1528 = vmatpush3.bf16.msra.mxu0 %v1651_v6 }
 0x731   :  { %1529 = vmatprep.subr.bf16.mxu0 %v1652_v8 }
 0x734   :  { %1530 = vmatpush3.bf16.msra.mxu0 %v1652_v8 }
 0x735   :  { %1531 = vmatprep.subr.bf16.mxu0 %v1653_v9 }
 0x738   :  { %1532 = vmatpush3.bf16.msra.mxu0 %v1653_v9 }
 0x739   :  { %1533 = vmatprep.subr.bf16.mxu0 %v1654_v10 }
 0x73c   :  { %1534 = vmatpush3.bf16.msra.mxu0 %v1654_v10 }
 0x73d   :  { %1535 = vmatprep.subr.bf16.mxu0 %v1655_v11 }
 0x740   :  { %1536 = vmatpush3.bf16.msra.mxu0 %v1655_v11 }
 0x741   :  { %1537 = vmatprep.subr.bf16.mxu0 %v1656_v12 }
 0x744   :  { %1538 = vmatpush3.bf16.msra.mxu0 %v1656_v12 }
 0x745   :  { %1539 = vmatprep.subr.bf16.mxu0 %v1657_v44 }
 0x748   :  { %1540 = vmatpush3.bf16.msra.mxu0 %v1657_v44 }
 0x7fe   :  { %v1517_v48 = vpop.f32.mrb[6].mxu0 }
 0x7ff   :  { %v1036_v49 = vadd.f32 %v1517_v48, %v1034_v47  ;;  %v1022_v50 = vpop.f32.mrb[7].mxu0 }
 0x800   :  { %v1035_v51 = vadd.f32 %v1034_v47, %v1022_v50  ;;  %v1272_v50 = vsub.s32 5, %v1904_v5 }
 0x801   :  { %v1038_v52 = vadd.f32 %v1036_v49, %v1900_v3 }
 0x802   :  { %v1037_v53 = vadd.f32 %v1035_v51, %v1896_v2  ;;  %v1273_v51 = vrot.slane %v1910_v7, %v1272_v50 }
 0x803   :  { %v1042_v54 = vsel %vm85_vm0, %v1038_v52, 0.0 }
 0x804   :  { %1043 = vadd.xlane.f32.xlu1 %v1042_v54  ;;  %v1039_v55 = vsel %vm85_vm0, %v1037_v53, 0.0 }
 0x805   :  { %1040 = vadd.xlane.f32.xlu0 %v1039_v55 }
 0x891   :  { %v1044_v56 = vpop.xlane.xlu1 %1043 }
 0x892   :  { %v1047_v57 = vmul.f32 0.03125, %v1044_v56  ;;  %v1041_v58 = vpop.xlane.xlu0 %1040 }
 0x893   :  { %v1046_v59 = vmul.f32 0.03125, %v1041_v58 }
 0x894   :  { %v2032_v60 = vsub.f32 %v1038_v52, %v1047_v57 }
 0x895   :  { %v1048_v61 = vsub.f32 %v1037_v53, %v1046_v59 }
 0x896   :  { %v1051_v3 = vmul.f32 %v2032_v60, %v2032_v60  ;;  %v1065_v40 = vmul.f32 %v1063_v32, %v2032_v60 }
 0x897   :  { %v1050_v62 = vmul.f32 %v1048_v61, %v1048_v61  ;;  %v1064_v34 = vmul.f32 %v1063_v32, %v1048_v61 }
 0x898   :  { %v1055_v2 = vsel %vm85_vm0, %v1051_v3, 0.0 }
 0x899   :  { %v1052_v63 = vsel %vm85_vm0, %v1050_v62, 0.0 }
 0x89a   :  { %1053 = vadd.xlane.f32.xlu0 %v1052_v63 }
 0x89e   :  { %1056 = vadd.xlane.f32.xlu0 %v1055_v2 }
 0x927   :  { %v1054_v13 = vpop.xlane.xlu0 %1053 }
 0x928   :  { %v1058_v14 = vmul.f32 0.032258064, %v1054_v13 }
 0x92a   :  { %1690 = vrsqrt.f32 %v1058_v14  ;;  %vm1068_vm5 = vcmp.eq.f32.partialorder %v1058_v14, inf  ;;  %v1071_v20 = vand.u32 2147483648, %v1058_v14  ;;  %vm1070_vm6 = vcmp.eq.f32.partialorder %v1058_v14, 0.0 }
 0x92b   :  { %v1057_v15 = vpop.xlane.xlu0 %1056 }
 0x92c   :  { %v1059_v16 = vmul.f32 0.032258064, %v1057_v15 }
 0x92e   :  { %1692 = vrsqrt.f32 %v1059_v16  ;;  %vm1075_vm7 = vcmp.eq.f32.partialorder %v1059_v16, inf  ;;  %v1078_v27 = vand.u32 2147483648, %v1059_v16  ;;  %vm1077_vm8 = vcmp.eq.f32.partialorder %v1059_v16, 0.0 }
 0x934   :  { %v1691_v18 = vpop.eup %1690 }
 0x935   :  { %v1067_v19 = vmul.f32 %v1691_v18, %v1058_v14 }
 0x937   :  { %v1069_v21 = vsel %vm1068_vm5, %v1058_v14, %v1067_v19 }
 0x938   :  { %v1693_v22 = vpop.eup %1692  ;;  %v1072_v23 = vsel %vm1070_vm6, %v1071_v20, %v1069_v21 }
 0x939   :  { %v1074_v24 = vmul.f32 %v1693_v22, %v1059_v16  ;;  %v1080_v26 = vadd.f32 1e-06, %v1072_v23 }
 0x93b   :  { %v1076_v29 = vsel %vm1075_vm7, %v1059_v16, %v1074_v24  ;;  %1694 = vrcp.f32 %v1080_v26  ;;  %v1300_v26 = vsub.s32 6, %v1904_v5 }
 0x93c   :  { %v1079_v17 = vsel %vm1077_vm8, %v1078_v27, %v1076_v29  ;;  %v1326_v29 = vsub.s32 7, %v1904_v5 }
 0x93d   :  { %v1081_v31 = vadd.f32 1e-06, %v1079_v17  ;;  %v1301_v27 = vrot.slane %v1910_v7, %v1300_v26 }
 0x93e   :  { %v1327_v17 = vrot.slane %v1910_v7, %v1326_v29 }
 0x93f   :  { %1696 = vrcp.f32 %v1081_v31 }
 0x945   :  { %v1695_v38 = vpop.eup %1694 }
 0x946   :  { %v1083_v39 = vmul.f32 %v1695_v38, %v1064_v34 }
 0x948   :  { %v1090_v41 = vadd.f32 %v1089_v36, %v1083_v39 }
 0x949   :  { %v1697_v42 = vpop.eup %1696 }
 0x94a   :  { %v1085_v43 = vmul.f32 %v1697_v42, %v1065_v40  ;;  %1522 = vmatprep.mubr.msk.f32.mxu1 %vm85_vm0, %v1090_v41 }
 0x94c   :  { %v1091_v35 = vadd.f32 %v1089_v36, %v1085_v43 }
 0x94e   :  { %1523 = vmatmul.mubr.msk.f32.vlgmr.msra.gmra.mrb[12].mxu1 %vm85_vm0, %v1091_v35 }
 0xa21   :  { %v1524_v45 = vpop.f32.mrb[12].mxu1 }
 0xa22   :  { %v1158_v28 = vadd.f32 %v1524_v45, %v1099_v25  ;;  %v1152_v46 = vpop.f32.mrb[13].mxu1 }
 0xa23   :  { %v1153_v47 = vadd.f32 %v1152_v46, %v1099_v25 }
 0xa24   :  { %v1162_v49 = vmax.f32 %v1158_v28, 0.0 }
 0xa25   :  { %v1161_v48 = vmax.f32 %v1153_v47, 0.0 }
 0xa27   :  { %1541 = vmatprep.mubr.f32.mxu0 %v1161_v48 }
 0xa28   :  { %1542 = vmatmul.mubr.f32.vlgmr.msra.gmra.mrb[8].mxu0 %v1162_v49 }
 0xafb   :  { %v1543_v52 = vpop.f32.mrb[8].mxu0 }
 0xafc   :  { %v1275_v53 = vadd.f32 %v1543_v52, %v1273_v51  ;;  %v1261_v54 = vpop.f32.mrb[9].mxu0 }
 0xafd   :  { %v1274_v55 = vadd.f32 %v1273_v51, %v1261_v54 }
 0xafe   :  { %v1277_v56 = vadd.f32 %v1275_v53, %v1091_v35 }
 0xaff   :  { %v1276_v57 = vadd.f32 %v1274_v55, %v1090_v41 }
 0xb00   :  { %v1281_v58 = vsel %vm85_vm0, %v1277_v56, 0.0 }
 0xb01   :  { %1282 = vadd.xlane.f32.xlu0 %v1281_v58  ;;  %v1278_v59 = vsel %vm85_vm0, %v1276_v57, 0.0 }
 0xb02   :  { %1279 = vadd.xlane.f32.xlu1 %v1278_v59 }
 0xb8e   :  { %v1283_v60 = vpop.xlane.xlu0 %1282 }
 0xb8f   :  { %v1285_v61 = vmul.f32 0.03125, %v1283_v60  ;;  %v1280_v62 = vpop.xlane.xlu1 %1279 }
 0xb90   :  { %v1284_v63 = vmul.f32 0.03125, %v1280_v62 }
 0xb91   :  { %v1287_v3 = vsub.f32 %v1277_v56, %v1285_v61 }
 0xb92   :  { %v1286_v2 = vsub.f32 %v1276_v57, %v1284_v63 }
 0xb93   :  { %v1289_v0 = vmul.f32 %v1287_v3, %v1287_v3  ;;  %v1303_v30 = vmul.f32 %v1301_v27, %v1287_v3 }
 0xb94   :  { %v1288_v1 = vmul.f32 %v1286_v2, %v1286_v2  ;;  %v1302_v32 = vmul.f32 %v1301_v27, %v1286_v2 }
 0xb95   :  { %v1293_v4 = vsel %vm85_vm0, %v1289_v0, 0.0 }
 0xb96   :  { %1294 = vadd.xlane.f32.xlu0 %v1293_v4  ;;  %v1290_v6 = vsel %vm85_vm0, %v1288_v1, 0.0 }
 0xb97   :  { %1291 = vadd.xlane.f32.xlu1 %v1290_v6 }
 0xc23   :  { %v1295_v8 = vpop.xlane.xlu0 %1294 }
 0xc24   :  { %v1297_v9 = vmul.f32 0.032258064, %v1295_v8  ;;  %v1292_v10 = vpop.xlane.xlu1 %1291 }
 0xc25   :  { %v1296_v11 = vmul.f32 0.032258064, %v1292_v10 }
 0xc26   :  { %1698 = vrsqrt.f32 %v1297_v9  ;;  %vm1313_vm9 = vcmp.eq.f32.partialorder %v1297_v9, inf  ;;  %v1316_v15 = vand.u32 2147483648, %v1297_v9  ;;  %vm1315_vm10 = vcmp.eq.f32.partialorder %v1297_v9, 0.0 }
 0xc27   :  { %1700 = vrsqrt.f32 %v1296_v11  ;;  %vm1306_vm11 = vcmp.eq.f32.partialorder %v1296_v11, inf  ;;  %v1309_v19 = vand.u32 2147483648, %v1296_v11  ;;  %vm1308_vm12 = vcmp.eq.f32.partialorder %v1296_v11, 0.0 }
 0xc30   :  { %v1699_v12 = vpop.eup %1698 }
 0xc31   :  { %v1701_v13 = vpop.eup %1700  ;;  %v1312_v14 = vmul.f32 %v1699_v12, %v1297_v9 }
 0xc32   :  { %v1305_v16 = vmul.f32 %v1701_v13, %v1296_v11 }
 0xc33   :  { %v1314_v18 = vsel %vm1313_vm9, %v1297_v9, %v1312_v14 }
 0xc34   :  { %v1317_v20 = vsel %vm1315_vm10, %v1316_v15, %v1314_v18  ;;  %v1307_v21 = vsel %vm1306_vm11, %v1296_v11, %v1305_v16 }
 0xc35   :  { %v1319_v22 = vadd.f32 1e-06, %v1317_v20  ;;  %v1310_v23 = vsel %vm1308_vm12, %v1309_v19, %v1307_v21 }
 0xc36   :  { %v1318_v24 = vadd.f32 1e-06, %v1310_v23 }
 0xc37   :  { %1702 = vrcp.f32 %v1319_v22 }
 0xc38   :  { %1704 = vrcp.f32 %v1318_v24 }
 0xc41   :  { %v1703_v31 = vpop.eup %1702 }
 0xc42   :  { %v1705_v33 = vpop.eup %1704  ;;  %v1323_v34 = vmul.f32 %v1703_v31, %v1303_v30 }
 0xc43   :  { %v1321_v36 = vmul.f32 %v1705_v33, %v1302_v32 }
 0xc44   :  { %v1329_v38 = vadd.f32 %v1327_v17, %v1323_v34 }
 0xc45   :  { %v1328_v39 = vadd.f32 %v1327_v17, %v1321_v36 }
 0xc46   :  { %1331 = vst.msk [vmem:[#allocation8 + $0x8] sm:$0xff] %vm85_vm0, %v1329_v38 }
 0xc47   :  { %1330 = vst.msk [vmem:[#allocation8] sm:$0xff] %vm85_vm0, %v1328_v39 }
 0xc48   :  { %1783 = shalt.err (!%p1780_p0)
}
 0xc49   :  { %s1784_s20 = scalar_lea.hbm %s2078_s4, 256 }
 0xc4a   :  { %p1785_p1 = scmp.ne.s32.totalorder %s2078_s4, %s1784_s20  ;;  %p1788_p2 = scmp.lt.u32.totalorder %s1784_s20, %s2078_s4 }
 0xc4c   :  { %p1790_p3 = pnand %p1788_p2, %p1785_p1 }
 0xc4e   :  { %1793 = shalt.err (!%p1790_p3)
}
 0xc4f   :  { %1343 = dma.vmem_to_hbm [thread:$0]  %s1338_s15, 256, %s2078_s4, [#allocation4], %s1802_s27, %s1802_s27, %s1803_s28  }
 0xc50   :  { %1798 = dma.done.wait [#allocation4], 256  }
 0xc51   :  { %1799 = vsyncadd [#allocation4], 4294967040 }
 0xc52   :  { %1347 = vsyncpa [#allocation3], 1 }
 0xc53   :  { %1348 = vsyncpa [#allocation6], 1 }
 0xc54   :  { %1349 = vsyncpa [#allocation4], 1 }

</bundles_post_ra>
